<compile_context>
chip_gen: v7x
topology: tpu7x:2x2x1
jax: 0.10.0
libtpu: 0.0.40
codegen_flags: <defaults>
</compile_context>

<pallas_src>
import jax
import jax.numpy as jnp
from jax.experimental import pallas as pl
from jax.experimental.pallas import tpu as pltpu

LANES = 128          # vreg lane width; lane-dense packing is 128 values per row
MAX_ROW_TILE = 2048  # (2048, 128) f32 tile = 1 MiB; x2 double-buffered fits all gens


def _fill_kernel(e_ref, o_ref):
    # e_ref: (1,) f32 in SMEM, already holds exp(10 * variance)
    # o_ref: output tile (either (row_tile, 128) lane-dense or (row_tile, 1))
    # Pure splat + store: no per-element EUP/VPU work in the tile.
    o_ref[...] = jnp.full(o_ref.shape, e_ref[0], dtype=o_ref.dtype)


def _choose_row_tile(extent, small_threshold):
    """Pick a row tile (multiple of 8, capped) and the resulting 1-D grid size.

    For small extents we use a single block equal to the full dim (always a legal
    block shape).  For larger extents we split into >= 2 steps so a v7x chip can
    shard the fill across its two TensorCores via dimension_semantics=("parallel",).
    """
    if extent <= small_threshold:
        return extent, 1
    tile = min(MAX_ROW_TILE, ((pl.cdiv(extent, 2) + 7) // 8) * 8)
    return tile, pl.cdiv(extent, tile)


def single_variance_forward(x, variance):
    """SingleVarianceNetwork.forward: (len(x), 1) filled with exp(10 * variance)."""
    n = x.shape[0]
    if n == 0:
        return jnp.zeros((0, 1), jnp.float32)

    # One scalar exp, fused by XLA into the surrounding graph; kernel only splats it.
    e = jnp.exp(jnp.asarray(variance, jnp.float32) * 10.0).reshape(1)

    smem_spec = pl.BlockSpec(memory_space=pltpu.MemorySpace.SMEM)
    cparams = pltpu.CompilerParams(dimension_semantics=("parallel",))

    if n % LANES == 0:
        # Lane-dense path: unmasked full-lane stores, then a free bitcast reshape.
        rows = n // LANES
        row_tile, steps = _choose_row_tile(rows, small_threshold=64)
        out = pl.pallas_call(
            _fill_kernel,
            out_shape=jax.ShapeDtypeStruct((rows, LANES), jnp.float32),
            grid=(steps,),
            in_specs=[smem_spec],
            out_specs=pl.BlockSpec((row_tile, LANES), lambda i: (i, 0)),
            compiler_params=cparams,
        )(e)
        return out.reshape(n, 1)

    # General path: write the (n, 1) output directly (edge block masked); no
    # wrapper-side slice/copy.  Payload is only n*4 bytes so masked stores are fine.
    row_tile, steps = _choose_row_tile(n, small_threshold=1024)
    out = pl.pallas_call(
        _fill_kernel,
        out_shape=jax.ShapeDtypeStruct((n, 1), jnp.float32),
        grid=(steps,),
        in_specs=[smem_spec],
        out_specs=pl.BlockSpec((row_tile, 1), lambda i: (i, 0)),
        compiler_params=cparams,
    )(e)
    return out


if __name__ == "__main__":
    key = jax.random.PRNGKey(0)

    init_val = 0.3
    variance = jnp.asarray(init_val, jnp.float32)   # the nn.Parameter('variance')
    expected = jnp.exp(variance * 10.0)

    # NeuS-style usage: x is a batch of 3D sample points; only len(x) matters.
    # Exercise both wrapper paths: n % 128 == 0 (lane-dense) and n % 128 != 0.
    x_dense = jax.random.normal(key, (640, 3), dtype=jnp.float32)     # 640 = 5 * 128
    x_ragged = jax.random.normal(key, (333, 3), dtype=jnp.float32)

    out_dense = jax.block_until_ready(single_variance_forward(x_dense, variance))
    out_ragged = jax.block_until_ready(single_variance_forward(x_ragged, variance))

    assert out_dense.shape == (640, 1) and out_dense.dtype == jnp.float32
    assert out_ragged.shape == (333, 1) and out_ragged.dtype == jnp.float32
    assert bool(jnp.allclose(out_dense, jnp.full((640, 1), expected),
                             rtol=1e-6, atol=0.0)), "value mismatch (dense path)"
    assert bool(jnp.allclose(out_ragged, jnp.full((333, 1), expected),
                             rtol=1e-6, atol=0.0)), "value mismatch (ragged path)"
    print("KERNEL_OK")
</pallas_src>

<mosaic_0001>
module attributes {stable_mosaic.version = 11 : i64} {
  func.func @_fill_kernel(%arg0: i32, %arg1: memref<1xf32, #tpu.memory_space<smem>>, %arg2: memref<5x128xf32, #tpu.memory_space<vmem>>) attributes {dimension_semantics = [#tpu.dimension_semantics<parallel>], iteration_bounds = array<i64: 1>, scalar_prefetch = 0 : i64, scratch_operands = 0 : i64, tpu.core_type = #tpu.core_type<tc>, window_params = [{transform_indices = @transform_0, window_bounds = array<i64: 1>}, {transform_indices = @transform_1, window_bounds = array<i64: 5, 128>}]} {
    %c0 = arith.constant 0 : index
    %0 = memref.load %arg1[%c0] : memref<1xf32, #tpu.memory_space<smem>>
    %1 = vector.broadcast %0 : f32 to vector<5x128xf32>
    %c0_0 = arith.constant 0 : index
    %c0_1 = arith.constant 0 : index
    %2 = vector.load %arg2[%c0_0, %c0_1] : memref<5x128xf32, #tpu.memory_space<vmem>>, vector<5x128xf32>
    tpu.vector_store %arg2[%c0_0, %c0_1], %1 {strides = array<i32>} : memref<5x128xf32, #tpu.memory_space<vmem>>, vector<5x128xf32>,
    return
  }
  func.func @transform_0(%arg0: i32) -> i32 {
    %c0_i32 = arith.constant 0 : i32
    %c0_i32_0 = arith.constant 0 : i32
    return %c0_i32 : i32
  }
  func.func @transform_1(%arg0: i32) -> (i32, i32) {
    %c0_i32 = arith.constant 0 : i32
    %c0_i32_0 = arith.constant 0 : i32
    return %arg0, %c0_i32 : i32, i32
  }
}

</mosaic_0001>

<bundles_post_ra>
// kernel: tpu_custom_call.1
= control target key start
LH: loop header
LB: loop body
LE: loop exit
PB: predicated region body
PF: predicated region fallthrough
CT: control target
= control target key end

     0   :  { %s78_s0 = inlined_call_operand.<no memory space> [shape: f32[1], index: 0, kind: input, shape index: {}]   ;;  %s79_s1 = inlined_call_operand.hbm [shape: f32[5,128], index: 1, kind: output, shape index: {}]  }
   0x1   :  { %v11_v0 = vstv %s78_s0 }
   0x2   :  { %7 = vsyncpa [#allocation4], 0  ;;  %12 = vst [vmem:[#allocation3] sm:$0x1f] %v11_v0  ;;  %s52_s8 = smov [#allocation3]  }
   0x3   :  { %s19_s9 = sshll.u32 %s52_s8, 4  ;;  %s20_s9 = int_to_ptr.vmem [resolvable:$true] %s19_s9 }
   0x4   :  { %s28_s10 = scalar_lea.vmem %s20_s9, 128  ;;  %p33_p1 = scmp.lt.s32.totalorder %s20_s9, %s20_s9 }
   0x5   :  { %p29_p0 = scmp.ne.s32.totalorder %s20_s9, %s28_s10  ;;  %p34_p2 = scmp.lt.s32.totalorder %s28_s10, %s28_s10 }
   0x7   :  { %p35_p3 = por %p34_p2, %p33_p1 }
   0x9   :  { %p36_p4 = pnand %p35_p3, %p29_p0 }
   0xb   :  { %39 = shalt.err (!%p36_p4)
}
   0xc   :  { %s40_s13 = scalar_lea.hbm %s79_s1, 128 }
   0xd   :  { %p41_p5 = scmp.ne.s32.totalorder %s79_s1, %s40_s13  ;;  %p44_p6 = scmp.lt.u32.totalorder %s40_s13, %s79_s1 }
   0xf   :  { %p46_p7 = pnand %p44_p6, %p41_p5 }
  0x11   :  { %49 = shalt.err (!%p46_p7)
}
  0x12   :  { %22 = dma.vmem_to_hbm [thread:$0]  %s20_s9, 128, %s79_s1, [#allocation4]  }
  0x13   :  { %50 = dma.done.wait [#allocation4], 128  }
  0x14   :  { %51 = vsyncadd [#allocation4], 4294967168 }
  0x15   :  { %26 = vsyncpa [#allocation4], 1 }

</bundles_post_ra>
